<compile_context>
chip_gen: v5e
topology: v5e:2x2
jax: 0.10.0
libtpu: 0.0.40
codegen_flags: <defaults>
</compile_context>

<pallas_src>
import jax
import jax.numpy as jnp
from jax.experimental import pallas as pl
from jax.experimental.pallas import tpu as pltpu


# --------------------------------------------------------------------------- #
# Kernel
# --------------------------------------------------------------------------- #
def bi_encoder_kernel(hist_ref, fcst_ref, w1h_ref, w1f_ref, b1_ref,
                      w2_ref, b2_ref, w3_ref, b3_ref, out_ref):
    cdt = w1h_ref.dtype  # compute (MXU input) dtype: bf16 or f32

    # Layer 1: two dots fill disjoint column ranges of the lane-dense hidden slab
    # (w1h occupies cols [0:Hh], w1f cols [Hh:Hh+Hf]; remaining columns are zero).
    h = jnp.dot(hist_ref[...].astype(cdt), w1h_ref[...],
                preferred_element_type=jnp.float32)
    h = h + jnp.dot(fcst_ref[...].astype(cdt), w1f_ref[...],
                    preferred_element_type=jnp.float32)
    h = jnp.maximum(h + b1_ref[...], 0.0)          # bias + ReLU in f32 (VPU)

    # Layer 2: block-diagonal W2 -> z = [hist_latent | fcst_latent | 0-pad].
    z = jnp.dot(h.astype(cdt), w2_ref[...],
                preferred_element_type=jnp.float32) + b2_ref[...]

    # Head: Linear(2*latent, latent) padded to 128 lanes (unmasked vst).
    y = jnp.dot(z.astype(cdt), w3_ref[...],
                preferred_element_type=jnp.float32) + b3_ref[...]
    out_ref[...] = y.astype(out_ref.dtype)


# --------------------------------------------------------------------------- #
# Weight preparation (run ONCE, outside the per-call path)
# --------------------------------------------------------------------------- #
def _round_up(x, m):
    return ((x + m - 1) // m) * m


def _cdiv(a, b):
    return (a + b - 1) // b


def prepare_fused_params(params, compute_dtype=jnp.bfloat16, out_pad=128):
    """Pre-place branch weights into lane-dense (128-multiple) slabs."""
    kh, hh = params["w1_h"].shape
    kf, hf = params["w1_f"].shape
    latent = params["b_out"].shape[-1]

    hpad = max(128, _round_up(hh + hf, 128))
    zpad = max(128, _round_up(2 * latent, 128))

    # Layer 1: hist weights in cols [0:hh], fcst weights in cols [hh:hh+hf].
    w1h = jnp.zeros((kh, hpad), jnp.float32).at[:, :hh].set(params["w1_h"])
    w1f = jnp.zeros((kf, hpad), jnp.float32).at[:, hh:hh + hf].set(params["w1_f"])
    b1 = jnp.zeros((1, hpad), jnp.float32)
    b1 = b1.at[0, :hh].set(params["b1_h"]).at[0, hh:hh + hf].set(params["b1_f"])

    # Layer 2: block-diagonal into the padded latent slab.
    w2 = jnp.zeros((hpad, zpad), jnp.float32)
    w2 = w2.at[:hh, :latent].set(params["w2_h"])
    w2 = w2.at[hh:hh + hf, latent:2 * latent].set(params["w2_f"])
    b2 = jnp.zeros((1, zpad), jnp.float32)
    b2 = b2.at[0, :latent].set(params["b2_h"]).at[0, latent:2 * latent].set(params["b2_f"])

    # Head.
    w3 = jnp.zeros((zpad, out_pad), jnp.float32).at[:2 * latent, :latent].set(params["w_out"])
    b3 = jnp.zeros((1, out_pad), jnp.float32).at[0, :latent].set(params["b_out"])

    # Weights stored in compute dtype (bf16 halves HBM/VMEM traffic); biases
    # stay f32 so bias-add / ReLU run on the f32 accumulator.
    return dict(
        w1h=w1h.astype(compute_dtype), w1f=w1f.astype(compute_dtype), b1=b1,
        w2=w2.astype(compute_dtype), b2=b2,
        w3=w3.astype(compute_dtype), b3=b3,
        latent_dim=int(latent), out_pad=int(out_pad),
    )


# --------------------------------------------------------------------------- #
# Forward wrapper
# --------------------------------------------------------------------------- #
def bi_encoder_forward(observed_data, available_forecasts, observed_tp,
                       fused_params, tile_b=256):
    del observed_tp  # encode_obs_time=False
    B = observed_data.shape[0]
    latent = fused_params["latent_dim"]
    out_pad = fused_params["out_pad"]

    cdt = fused_params["w1h"].dtype
    store_dtype = jnp.bfloat16 if cdt == jnp.bfloat16 else jnp.float32

    # nn.Flatten() equivalents; no concat (each branch is its own kernel input,
    # casting to the MXU dtype happens inside the kernel).
    hist = observed_data.reshape(B, -1)
    fcst = available_forecasts.reshape(B, -1)
    kh, kf = hist.shape[-1], fcst.shape[-1]

    # Balanced batch tiles; >=2 tiles when B permits so v7x uses both TCs.
    n_tiles = max(1, _cdiv(B, tile_b))
    if B >= 16:
        n_tiles = max(n_tiles, 2)
    tb = _round_up(_cdiv(B, n_tiles), 8)
    b_pad = tb * n_tiles
    if b_pad != B:
        hist = jnp.pad(hist, ((0, b_pad - B), (0, 0)))
        fcst = jnp.pad(fcst, ((0, b_pad - B), (0, 0)))

    w1h, w1f, b1 = fused_params["w1h"], fused_params["w1f"], fused_params["b1"]
    w2, b2 = fused_params["w2"], fused_params["b2"]
    w3, b3 = fused_params["w3"], fused_params["b3"]

    def resident(a):  # whole-array block, constant index -> VMEM-resident across steps
        return pl.BlockSpec(a.shape, lambda i, _nd=a.ndim: (0,) * _nd)

    in_arrays = (hist, fcst, w1h, w1f, b1, w2, b2, w3, b3)
    flops = 2 * b_pad * (kh * w1h.shape[1] + kf * w1f.shape[1]
                         + w2.shape[0] * w2.shape[1] + w3.shape[0] * w3.shape[1])
    bytes_accessed = (sum(int(a.size) * a.dtype.itemsize for a in in_arrays)
                      + b_pad * out_pad * jnp.dtype(store_dtype).itemsize)

    out = pl.pallas_call(
        bi_encoder_kernel,
        out_shape=jax.ShapeDtypeStruct((b_pad, out_pad), store_dtype),
        grid=(n_tiles,),
        in_specs=[
            pl.BlockSpec((tb, kh), lambda i: (i, 0)),   # hist activations, batch-tiled
            pl.BlockSpec((tb, kf), lambda i: (i, 0)),   # fcst activations, batch-tiled
            resident(w1h), resident(w1f), resident(b1),
            resident(w2), resident(b2),
            resident(w3), resident(b3),
        ],
        out_specs=pl.BlockSpec((tb, out_pad), lambda i: (i, 0)),
        compiler_params=pltpu.CompilerParams(
            dimension_semantics=("parallel",),          # shard batch across TCs (v7x)
            vmem_limit_bytes=32 * 1024 * 1024,          # safe on v5e/v6e/v7x
        ),
        cost_estimate=pl.CostEstimate(flops=int(flops), transcendentals=0,
                                      bytes_accessed=int(bytes_accessed)),
    )(*in_arrays)

    return out[:B, :latent].astype(jnp.float32)


# --------------------------------------------------------------------------- #
# Pure-JAX reference (f32, mirrors the PyTorch module)
# --------------------------------------------------------------------------- #
def bi_encoder_reference(observed_data, available_forecasts, params):
    B = observed_data.shape[0]
    hist_flat = observed_data.reshape(B, -1)
    fcst_flat = available_forecasts.reshape(B, -1)

    h = jnp.maximum(hist_flat @ params["w1_h"] + params["b1_h"], 0.0)
    hist_latent = h @ params["w2_h"] + params["b2_h"]

    f = jnp.maximum(fcst_flat @ params["w1_f"] + params["b1_f"], 0.0)
    fcst_latent = f @ params["w2_f"] + params["b2_f"]

    cat = jnp.concatenate([hist_latent, fcst_latent], axis=-1)
    return cat @ params["w_out"] + params["b_out"]


def init_params(key, hist_dim_in, fcst_dim_in, hist_tsteps, fcst_tsteps,
                latent_dim, hidden_units):
    hidden_h = hidden_units // 2  # hist DNNEncoder gets hidden_units // 2
    ks = jax.random.split(key, 10)

    def lin(kw, kb, fan_in, fan_out):
        bound = 1.0 / jnp.sqrt(fan_in)
        w = jax.random.uniform(kw, (fan_in, fan_out), jnp.float32, -bound, bound)
        b = jax.random.uniform(kb, (fan_out,), jnp.float32, -bound, bound)
        return w, b

    w1_h, b1_h = lin(ks[0], ks[1], hist_dim_in * hist_tsteps, hidden_h)
    w2_h, b2_h = lin(ks[2], ks[3], hidden_h, latent_dim)
    w1_f, b1_f = lin(ks[4], ks[5], fcst_dim_in * fcst_tsteps, hidden_units)
    w2_f, b2_f = lin(ks[6], ks[7], hidden_units, latent_dim)
    w_out, b_out = lin(ks[8], ks[9], latent_dim * 2, latent_dim)

    return dict(w1_h=w1_h, b1_h=b1_h, w2_h=w2_h, b2_h=b2_h,
                w1_f=w1_f, b1_f=b1_f, w2_f=w2_f, b2_f=b2_f,
                w_out=w_out, b_out=b_out)


if __name__ == "__main__":
    # Small shapes consistent with BiEncoder's forward.
    B = 2
    hist_dim_in, fcst_dim_in = 4, 3
    hist_tsteps, fcst_tsteps = 8, 8
    latent_dim = 16
    hidden_units = 32

    key = jax.random.PRNGKey(0)
    k_data, k_fcst, k_params = jax.random.split(key, 3)

    observed_data = jax.random.normal(k_data, (B, hist_tsteps, hist_dim_in), jnp.float32)
    available_forecasts = jax.random.normal(k_fcst, (B, fcst_tsteps, fcst_dim_in), jnp.float32)
    observed_tp = jnp.linspace(0.0, 1.0, hist_tsteps)  # unused (encode_obs_time=False)

    params = init_params(k_params, hist_dim_in, fcst_dim_in,
                         hist_tsteps, fcst_tsteps, latent_dim, hidden_units)

    ref = bi_encoder_reference(observed_data, available_forecasts, params)

    # 1) f32 compute path: exact-semantics check against the reference.
    fused_f32 = prepare_fused_params(params, compute_dtype=jnp.float32)
    out_f32 = bi_encoder_forward(observed_data, available_forecasts, observed_tp, fused_f32)
    out_f32 = jax.block_until_ready(out_f32)
    assert out_f32.shape == (B, latent_dim)
    assert jnp.allclose(out_f32, ref, atol=1e-5, rtol=1e-5)

    # 2) bf16 storage / MXU path with f32 accumulation, bf16 output slab (perf config).
    fused_bf16 = prepare_fused_params(params, compute_dtype=jnp.bfloat16)
    out_bf16 = bi_encoder_forward(observed_data, available_forecasts, observed_tp, fused_bf16)
    out_bf16 = jax.block_until_ready(out_bf16)
    assert out_bf16.shape == (B, latent_dim)
    assert jnp.allclose(out_bf16, ref, atol=3e-2, rtol=3e-2)

    print("KERNEL_OK")
</pallas_src>

<mosaic_0001>
module attributes {stable_mosaic.version = 11 : i64} {
  func.func @bi_encoder_kernel(%arg0: i32, %arg1: memref<8x32xf32, #tpu.memory_space<vmem>>, %arg2: memref<8x24xf32, #tpu.memory_space<vmem>>, %arg3: memref<32x128xf32, #tpu.memory_space<vmem>>, %arg4: memref<24x128xf32, #tpu.memory_space<vmem>>, %arg5: memref<1x128xf32, #tpu.memory_space<vmem>>, %arg6: memref<128x128xf32, #tpu.memory_space<vmem>>, %arg7: memref<1x128xf32, #tpu.memory_space<vmem>>, %arg8: memref<128x128xf32, #tpu.memory_space<vmem>>, %arg9: memref<1x128xf32, #tpu.memory_space<vmem>>, %arg10: memref<8x128xf32, #tpu.memory_space<vmem>>) attributes {dimension_semantics = [#tpu.dimension_semantics<parallel>], iteration_bounds = array<i64: 1>, scalar_prefetch = 0 : i64, scratch_operands = 0 : i64, tpu.core_type = #tpu.core_type<tc>, window_params = [{transform_indices = @transform_0, window_bounds = array<i64: 8, 32>}, {transform_indices = @transform_1, window_bounds = array<i64: 8, 24>}, {pipeline_mode = #tpu.pipeline_mode<synchronous>, transform_indices = @transform_2, window_bounds = array<i64: 32, 128>}, {pipeline_mode = #tpu.pipeline_mode<synchronous>, transform_indices = @transform_3, window_bounds = array<i64: 24, 128>}, {pipeline_mode = #tpu.pipeline_mode<synchronous>, transform_indices = @transform_4, window_bounds = array<i64: 1, 128>}, {pipeline_mode = #tpu.pipeline_mode<synchronous>, transform_indices = @transform_5, window_bounds = array<i64: 128, 128>}, {pipeline_mode = #tpu.pipeline_mode<synchronous>, transform_indices = @transform_6, window_bounds = array<i64: 1, 128>}, {pipeline_mode = #tpu.pipeline_mode<synchronous>, transform_indices = @transform_7, window_bounds = array<i64: 128, 128>}, {pipeline_mode = #tpu.pipeline_mode<synchronous>, transform_indices = @transform_8, window_bounds = array<i64: 1, 128>}, {transform_indices = @transform_9, window_bounds = array<i64: 8, 128>}]} {
    %c0 = arith.constant 0 : index
    %c0_0 = arith.constant 0 : index
    %0 = vector.load %arg1[%c0, %c0_0] : memref<8x32xf32, #tpu.memory_space<vmem>>, vector<8x32xf32>
    %c0_1 = arith.constant 0 : index
    %c0_2 = arith.constant 0 : index
    %1 = vector.load %arg3[%c0_1, %c0_2] : memref<32x128xf32, #tpu.memory_space<vmem>>, vector<32x128xf32>
    %cst = arith.constant dense<0.000000e+00> : vector<8x128xf32>
    %2 = tpu.matmul %0, %1, %cst {dimension_numbers = #tpu.dot_dimension_numbers<[1], [0], [0], [1], [0, 0, 1, 1], [], []>} : vector<8x32xf32>, vector<32x128xf32>, vector<8x128xf32> -> vector<8x128xf32>
    %c0_3 = arith.constant 0 : index
    %c0_4 = arith.constant 0 : index
    %3 = vector.load %arg2[%c0_3, %c0_4] : memref<8x24xf32, #tpu.memory_space<vmem>>, vector<8x24xf32>
    %c0_5 = arith.constant 0 : index
    %c0_6 = arith.constant 0 : index
    %4 = vector.load %arg4[%c0_5, %c0_6] : memref<24x128xf32, #tpu.memory_space<vmem>>, vector<24x128xf32>
    %cst_7 = arith.constant dense<0.000000e+00> : vector<8x128xf32>
    %5 = tpu.matmul %3, %4, %cst_7 {dimension_numbers = #tpu.dot_dimension_numbers<[1], [0], [0], [1], [0, 0, 1, 1], [], []>} : vector<8x24xf32>, vector<24x128xf32>, vector<8x128xf32> -> vector<8x128xf32>
    %6 = arith.addf %2, %5 : vector<8x128xf32>
    %c0_8 = arith.constant 0 : index
    %c0_9 = arith.constant 0 : index
    %7 = vector.load %arg5[%c0_8, %c0_9] : memref<1x128xf32, #tpu.memory_space<vmem>>, vector<1x128xf32>
    %8 = vector.broadcast %7 : vector<1x128xf32> to vector<8x128xf32>
    %9 = arith.addf %6, %8 : vector<8x128xf32>
    %cst_10 = arith.constant 0.000000e+00 : f32
    %10 = vector.broadcast %cst_10 : f32 to vector<8x128xf32>
    %11 = arith.maximumf %9, %10 : vector<8x128xf32>
    %c0_11 = arith.constant 0 : index
    %c0_12 = arith.constant 0 : index
    %12 = vector.load %arg6[%c0_11, %c0_12] : memref<128x128xf32, #tpu.memory_space<vmem>>, vector<128x128xf32>
    %cst_13 = arith.constant dense<0.000000e+00> : vector<8x128xf32>
    %13 = tpu.matmul %11, %12, %cst_13 {dimension_numbers = #tpu.dot_dimension_numbers<[1], [0], [0], [1], [0, 0, 1, 1], [], []>} : vector<8x128xf32>, vector<128x128xf32>, vector<8x128xf32> -> vector<8x128xf32>
    %c0_14 = arith.constant 0 : index
    %c0_15 = arith.constant 0 : index
    %14 = vector.load %arg7[%c0_14, %c0_15] : memref<1x128xf32, #tpu.memory_space<vmem>>, vector<1x128xf32>
    %15 = vector.broadcast %14 : vector<1x128xf32> to vector<8x128xf32>
    %16 = arith.addf %13, %15 : vector<8x128xf32>
    %c0_16 = arith.constant 0 : index
    %c0_17 = arith.constant 0 : index
    %17 = vector.load %arg8[%c0_16, %c0_17] : memref<128x128xf32, #tpu.memory_space<vmem>>, vector<128x128xf32>
    %cst_18 = arith.constant dense<0.000000e+00> : vector<8x128xf32>
    %18 = tpu.matmul %16, %17, %cst_18 {dimension_numbers = #tpu.dot_dimension_numbers<[1], [0], [0], [1], [0, 0, 1, 1], [], []>} : vector<8x128xf32>, vector<128x128xf32>, vector<8x128xf32> -> vector<8x128xf32>
    %c0_19 = arith.constant 0 : index
    %c0_20 = arith.constant 0 : index
    %19 = vector.load %arg9[%c0_19, %c0_20] : memref<1x128xf32, #tpu.memory_space<vmem>>, vector<1x128xf32>
    %20 = vector.broadcast %19 : vector<1x128xf32> to vector<8x128xf32>
    %21 = arith.addf %18, %20 : vector<8x128xf32>
    %c0_21 = arith.constant 0 : index
    %c0_22 = arith.constant 0 : index
    %22 = vector.load %arg10[%c0_21, %c0_22] : memref<8x128xf32, #tpu.memory_space<vmem>>, vector<8x128xf32>
    tpu.vector_store %arg10[%c0_21, %c0_22], %21 {strides = array<i32>} : memref<8x128xf32, #tpu.memory_space<vmem>>, vector<8x128xf32>,
    return
  }
  func.func @transform_0(%arg0: i32) -> (i32, i32) {
    %c0_i32 = arith.constant 0 : i32
    %c0_i32_0 = arith.constant 0 : i32
    return %arg0, %c0_i32 : i32, i32
  }
  func.func @transform_1(%arg0: i32) -> (i32, i32) {
    %c0_i32 = arith.constant 0 : i32
    %c0_i32_0 = arith.constant 0 : i32
    return %arg0, %c0_i32 : i32, i32
  }
  func.func @transform_2(%arg0: i32) -> (i32, i32) {
    %c0_i32 = arith.constant 0 : i32
    %c0_i32_0 = arith.constant 0 : i32
    %c0_i32_1 = arith.constant 0 : i32
    return %c0_i32, %c0_i32_0 : i32, i32
  }
  func.func @transform_3(%arg0: i32) -> (i32, i32) {
    %c0_i32 = arith.constant 0 : i32
    %c0_i32_0 = arith.constant 0 : i32
    %c0_i32_1 = arith.constant 0 : i32
    return %c0_i32, %c0_i32_0 : i32, i32
  }
  func.func @transform_4(%arg0: i32) -> (i32, i32) {
    %c0_i32 = arith.constant 0 : i32
    %c0_i32_0 = arith.constant 0 : i32
    %c0_i32_1 = arith.constant 0 : i32
    return %c0_i32, %c0_i32_0 : i32, i32
  }
  func.func @transform_5(%arg0: i32) -> (i32, i32) {
    %c0_i32 = arith.constant 0 : i32
    %c0_i32_0 = arith.constant 0 : i32
    %c0_i32_1 = arith.constant 0 : i32
    return %c0_i32, %c0_i32_0 : i32, i32
  }
  func.func @transform_6(%arg0: i32) -> (i32, i32) {
    %c0_i32 = arith.constant 0 : i32
    %c0_i32_0 = arith.constant 0 : i32
    %c0_i32_1 = arith.constant 0 : i32
    return %c0_i32, %c0_i32_0 : i32, i32
  }
  func.func @transform_7(%arg0: i32) -> (i32, i32) {
    %c0_i32 = arith.constant 0 : i32
    %c0_i32_0 = arith.constant 0 : i32
    %c0_i32_1 = arith.constant 0 : i32
    return %c0_i32, %c0_i32_0 : i32, i32
  }
  func.func @transform_8(%arg0: i32) -> (i32, i32) {
    %c0_i32 = arith.constant 0 : i32
    %c0_i32_0 = arith.constant 0 : i32
    %c0_i32_1 = arith.constant 0 : i32
    return %c0_i32, %c0_i32_0 : i32, i32
  }
  func.func @transform_9(%arg0: i32) -> (i32, i32) {
    %c0_i32 = arith.constant 0 : i32
    %c0_i32_0 = arith.constant 0 : i32
    return %arg0, %c0_i32 : i32, i32
  }
}

</mosaic_0001>

<bundles_post_ra>
// kernel: tpu_custom_call.1
= control target key start
LH: loop header
LB: loop body
LE: loop exit
PB: predicated region body
PF: predicated region fallthrough
CT: control target
= control target key end

     0   :  { %14 = vsyncpa [#allocation3], 0  ;;  %s568_s0 = inlined_call_operand.hbm [shape: f32[8,32], index: 0, kind: input, shape index: {}]   ;;  %s569_s1 = inlined_call_operand.hbm [shape: f32[8,24], index: 1, kind: input, shape index: {}]   ;;  %s570_s2 = inlined_call_operand.hbm [shape: f32[32,128], index: 2, kind: input, shape index: {}]   ;;  %s571_s3 = inlined_call_operand.hbm [shape: f32[24,128], index: 3, kind: input, shape index: {}]   ;;  %s572_s4 = inlined_call_operand.vmem [shape: f32[1,128], index: 4, kind: input, shape index: {}]   ;;  %s573_s5 = inlined_call_operand.hbm [shape: f32[128,128], index: 5, kind: input, shape index: {}]   ;;  %s574_s6 = inlined_call_operand.vmem [shape: f32[1,128], index: 6, kind: input, shape index: {}]   ;;  %s575_s7 = inlined_call_operand.hbm [shape: f32[128,128], index: 7, kind: input, shape index: {}]   ;;  %s576_s8 = inlined_call_operand.vmem [shape: f32[1,128], index: 8, kind: input, shape index: {}]   ;;  %s577_s9 = inlined_call_operand.hbm [shape: f32[8,128], index: 9, kind: output, shape index: {}]  }
   0x1   :  { %15 = vsyncpa [#allocation6], 0 }
   0x2   :  { %16 = vsyncpa [#allocation9], 0 }
   0x3   :  { %17 = vsyncpa [#allocation12], 0  ;;  %s35_s11 = sshll.u32 %s569_s1, 4  ;;  %s36_s11 = int_to_ptr.hbm [resolvable:$true] %s35_s11 }
   0x4   :  { %18 = vsyncpa [#allocation4], 0  ;;  %s479_s12 = smov [#allocation5]   ;;  %s58_s16 = sshll.u32 %s571_s3, 4  ;;  %s59_s16 = int_to_ptr.hbm [resolvable:$true] %s58_s16 }
   0x5   :  { %s37_s13 = sshll.u32 %s479_s12, 4  ;;  %s480_s17 = smov [#allocation8]   ;;  %s38_s13 = int_to_ptr.vmem [resolvable:$true] %s37_s13 }
   0x6   :  { %40 = dma.hbm_to_vmem [thread:$0]  %s36_s11, 128, %s38_s13, [#allocation6]  }
   0x7   :  { %s60_s18 = sshll.u32 %s480_s17, 4  ;;  %s24_s21 = sshll.u32 %s568_s0, 4  ;;  %s61_s18 = int_to_ptr.vmem [resolvable:$true] %s60_s18  ;;  %s25_s21 = int_to_ptr.hbm [resolvable:$true] %s24_s21 }
   0x8   :  { %s481_s1 = smov 128   ;;  %s482_s22 = smov 8  }
   0x9   :  { %66 = dma.hbm_to_vmem [thread:$0]  %s59_s16, 384, %s61_s18, [#allocation9], %s481_s1, %s481_s1, %s482_s22  }
   0xa   :  { %s45_s25 = sshll.u32 %s570_s2, 4  ;;  %s483_s26 = smov [#allocation2]   ;;  %s46_s25 = int_to_ptr.hbm [resolvable:$true] %s45_s25 }
   0xb   :  { %s26_s27 = sshll.u32 %s483_s26, 4  ;;  %s484_s3 = smov [#allocation7]   ;;  %s27_s27 = int_to_ptr.vmem [resolvable:$true] %s26_s27 }
   0xc   :  { %29 = dma.hbm_to_vmem [thread:$0]  %s25_s21, 128, %s27_s27, [#allocation3]  }
   0xd   :  { %s47_s28 = sshll.u32 %s484_s3, 4  ;;  %s73_s0 = sshll.u32 %s573_s5, 4  ;;  %s48_s28 = int_to_ptr.vmem [resolvable:$true] %s47_s28  ;;  %s74_s0 = int_to_ptr.hbm [resolvable:$true] %s73_s0 }
   0xe   :  { %53 = dma.hbm_to_vmem [thread:$0]  %s46_s25, 512, %s48_s28, [#allocation6], %s481_s1, %s481_s1, %s482_s22  }
   0xf   :  { %s88_s12 = sshll.u32 %s575_s7, 4  ;;  %s485_s13 = smov [#allocation10]   ;;  %s89_s12 = int_to_ptr.hbm [resolvable:$true] %s88_s12 }
  0x10   :  { %s75_s2 = sshll.u32 %s485_s13, 4  ;;  %s486_s14 = smov [#allocation11]   ;;  %s76_s2 = int_to_ptr.vmem [resolvable:$true] %s75_s2 }
  0x11   :  { %81 = dma.hbm_to_vmem [thread:$0]  %s74_s0, 2048, %s76_s2, [#allocation9], %s481_s1, %s481_s1, %s482_s22  }
  0x12   :  { %s90_s15 = sshll.u32 %s486_s14, 4  ;;  %s91_s15 = int_to_ptr.vmem [resolvable:$true] %s90_s15 }
  0x13   :  { %96 = dma.hbm_to_vmem [thread:$0]  %s89_s12, 2048, %s91_s15, [#allocation12], %s481_s1, %s481_s1, %s482_s22  }
  0x14   :  { %469 = dma.done.wait [#allocation3], 128  }
  0x15   :  { %470 = vsyncadd [#allocation3], 4294967168 }
  0x16   :  { %471 = dma.done.wait [#allocation6], 640  }
  0x17   :  { %472 = vsyncadd [#allocation6], 4294966656 }
  0x18   :  { %473 = dma.done.wait [#allocation9], 2432  }
  0x19   :  { %474 = vsyncadd [#allocation9], 4294964864 }
  0x1a   :  { %475 = dma.done.wait [#allocation12], 2048  }
  0x1b   :  { %476 = vsyncadd [#allocation12], 4294965248  ;;  %v127_v0 = vld [vmem:[#allocation7 + $0x18] sm:$0xff]  ;;  %v131_v1 = vld [vmem:[#allocation8 + $0x10] sm:$0xff]  ;;  %vm132_vm0 = vcmask 195584   ;;  %vm156_vm1 = vcmask 261120  }
  0x1c   :  { %v126_v2 = vld [vmem:[#allocation7 + $0x10] sm:$0xff]  ;;  %172 = vmatpush.msra.mxu1 %v127_v0  ;;  %149 = vmatpush.msra.mxu0 %v131_v1  ;;  %v130_v3 = vld [vmem:[#allocation8 + $0x8] sm:$0xff]  ;;  %v129_v5 = vld [vmem:[#allocation8] sm:$0xff]  ;;  %s487_s19 = smov [#allocation13]   ;;  %s274_s22 = sshll.u32 %s577_s9, 4  ;;  %s275_s22 = int_to_ptr.hbm [resolvable:$true] %s274_s22 }
  0x1d   :  { %v125_v4 = vld [vmem:[#allocation7 + $0x8] sm:$0xff]  ;;  %v128_v6 = vld [vmem:[#allocation5] sm:$0xff]  ;;  %v201_v7 = vld [vmem:[#allocation10 + $0x78] sm:$0xff]  ;;  %s272_s20 = sshll.u32 %s487_s19, 4  ;;  %s273_s20 = int_to_ptr.vmem [resolvable:$true] %s272_s20 }
  0x1e   :  { %173 = vmatpush.msra.mxu1 %v126_v2  ;;  %150 = vmatpush.msra.mxu0 %v130_v3  ;;  %v200_v8 = vld [vmem:[#allocation10 + $0x70] sm:$0xff]  ;;  %v124_v9 = vld [vmem:[#allocation7] sm:$0xff]  ;;  %v123_v10 = vld [vmem:[#allocation2] sm:$0xff] }
  0x1f   :  { %206 = vmatpush.msra.mxu2 %v201_v7  ;;  %v199_v11 = vld [vmem:[#allocation10 + $0x68] sm:$0xff]  ;;  %v198_v12 = vld [vmem:[#allocation10 + $0x60] sm:$0xff]  ;;  %v197_v13 = vld [vmem:[#allocation10 + $0x58] sm:$0xff] }
  0x20   :  { %174 = vmatpush.msra.mxu1 %v125_v4  ;;  %151 = vmatpush.msra.mxu0 %v129_v5  ;;  %v196_v14 = vld [vmem:[#allocation10 + $0x50] sm:$0xff]  ;;  %v195_v15 = vld [vmem:[#allocation10 + $0x48] sm:$0xff]  ;;  %v194_v16 = vld [vmem:[#allocation10 + $0x40] sm:$0xff] }
  0x21   :  { %287 = vmatmul.msk.f32.vlgmr.msra.gmra.mxu0 %vm132_vm0, %v128_v6  ;;  %207 = vmatpush.msra.mxu2 %v200_v8  ;;  %v193_v17 = vld [vmem:[#allocation10 + $0x38] sm:$0xff]  ;;  %v192_v18 = vld [vmem:[#allocation10 + $0x30] sm:$0xff]  ;;  %v191_v19 = vld [vmem:[#allocation10 + $0x28] sm:$0xff] }
  0x22   :  { %175 = vmatpush.msra.mxu1 %v124_v9  ;;  %v190_v20 = vld [vmem:[#allocation10 + $0x20] sm:$0xff]  ;;  %v189_v21 = vld [vmem:[#allocation10 + $0x18] sm:$0xff]  ;;  %v188_v22 = vld [vmem:[#allocation10 + $0x10] sm:$0xff] }
  0x23   :  { %288 = vmatmul.msk.f32.vlgmr.msra.gmra.mxu1 %vm156_vm1, %v123_v10  ;;  %208 = vmatpush.msra.mxu2 %v199_v11  ;;  %v187_v23 = vld [vmem:[#allocation10 + $0x8] sm:$0xff]  ;;  %v186_v24 = vld [vmem:[#allocation10] sm:$0xff]  ;;  %v241_v25 = vld [vmem:[#allocation11 + $0x78] sm:$0xff] }
  0x24   :  { %v240_v26 = vld [vmem:[#allocation11 + $0x70] sm:$0xff]  ;;  %246 = vmatpush.msra.mxu3 %v241_v25  ;;  %v239_v27 = vld [vmem:[#allocation11 + $0x68] sm:$0xff]  ;;  %v238_v28 = vld [vmem:[#allocation11 + $0x60] sm:$0xff] }
  0x25   :  { %209 = vmatpush.msra.mxu2 %v198_v12  ;;  %v237_v29 = vld [vmem:[#allocation11 + $0x58] sm:$0xff]  ;;  %v236_v30 = vld [vmem:[#allocation11 + $0x50] sm:$0xff]  ;;  %v235_v31 = vld [vmem:[#allocation11 + $0x48] sm:$0xff] }
  0x26   :  { %247 = vmatpush.msra.mxu3 %v240_v26  ;;  %v234_v32 = vld [vmem:[#allocation11 + $0x40] sm:$0xff]  ;;  %v233_v33 = vld [vmem:[#allocation11 + $0x38] sm:$0xff]  ;;  %v232_v34 = vld [vmem:[#allocation11 + $0x30] sm:$0xff] }
  0x27   :  { %210 = vmatpush.msra.mxu2 %v197_v13  ;;  %v231_v35 = vld [vmem:[#allocation11 + $0x28] sm:$0xff]  ;;  %v230_v36 = vld [vmem:[#allocation11 + $0x20] sm:$0xff]  ;;  %v229_v37 = vld [vmem:[#allocation11 + $0x18] sm:$0xff] }
  0x28   :  { %248 = vmatpush.msra.mxu3 %v239_v27  ;;  %v298_v39 = vld [vmem:[%s572_s4] ss:$0 sm:$0xff]  ;;  %v228_v40 = vld [vmem:[#allocation11 + $0x10] sm:$0xff]  ;;  %v227_v45 = vld [vmem:[#allocation11 + $0x8] sm:$0xff] }
  0x29   :  { %211 = vmatpush.msra.mxu2 %v196_v14  ;;  %v226_v46 = vld [vmem:[#allocation11] sm:$0xff]  ;;  %v299_v47 = vld [vmem:[%s574_s6] ss:$0 sm:$0xff] }
  0x2a   :  { %249 = vmatpush.msra.mxu3 %v238_v28  ;;  %v300_v50 = vld [vmem:[%s576_s8] ss:$0 sm:$0xff] }
  0x2b   :  { %212 = vmatpush.msra.mxu2 %v195_v15 }
  0x2c   :  { %250 = vmatpush.msra.mxu3 %v237_v29 }
  0x2d   :  { %213 = vmatpush.msra.mxu2 %v194_v16 }
  0x2e   :  { %251 = vmatpush.msra.mxu3 %v236_v30 }
  0x2f   :  { %214 = vmatpush.msra.mxu2 %v193_v17 }
  0x30   :  { %252 = vmatpush.msra.mxu3 %v235_v31 }
  0x31   :  { %215 = vmatpush.msra.mxu2 %v192_v18 }
  0x32   :  { %253 = vmatpush.msra.mxu3 %v234_v32 }
  0x33   :  { %216 = vmatpush.msra.mxu2 %v191_v19 }
  0x34   :  { %254 = vmatpush.msra.mxu3 %v233_v33 }
  0x35   :  { %217 = vmatpush.msra.mxu2 %v190_v20 }
  0x36   :  { %255 = vmatpush.msra.mxu3 %v232_v34 }
  0x37   :  { %218 = vmatpush.msra.mxu2 %v189_v21 }
  0x38   :  { %256 = vmatpush.msra.mxu3 %v231_v35 }
  0x39   :  { %219 = vmatpush.msra.mxu2 %v188_v22 }
  0x3a   :  { %257 = vmatpush.msra.mxu3 %v230_v36 }
  0x3b   :  { %220 = vmatpush.msra.mxu2 %v187_v23 }
  0x3c   :  { %258 = vmatpush.msra.mxu3 %v229_v37 }
  0x3d   :  { %221 = vmatpush.msra.mxu2 %v186_v24 }
  0x3e   :  { %259 = vmatpush.msra.mxu3 %v228_v40 }
  0x40   :  { %260 = vmatpush.msra.mxu3 %v227_v45 }
  0x42   :  { %261 = vmatpush.msra.mxu3 %v226_v46 }
  0x9e   :  { %v153_v38 = vpop.f32.mrf.mxu0 }
  0xa0   :  { %v177_v41 = vpop.f32.mrf.mxu1 }
  0xa1   :  { %v178_v42 = vadd.f32 %v177_v41, %v153_v38 }
  0xa3   :  { %v184_v43 = vadd.f32 %v298_v39, %v178_v42 }
  0xa5   :  { %v185_v44 = vmax.f32 %v184_v43, 0.0 }
  0xa7   :  { %222 = vmatmul.f32.vlgmr.msra.gmra.mxu2 %v185_v44 }
 0x12a   :  { %v223_v48 = vpop.f32.mrf.mxu2 }
 0x12b   :  { %v224_v49 = vadd.f32 %v299_v47, %v223_v48 }
 0x12d   :  { %262 = vmatmul.f32.vlgmr.msra.gmra.mxu3 %v224_v49 }
 0x1b0   :  { %v263_v51 = vpop.f32.mrf.mxu3 }
 0x1b1   :  { %v264_v52 = vadd.f32 %v300_v50, %v263_v51 }
 0x1b3   :  { %266 = vst [vmem:[#allocation13] sm:$0xff] %v264_v52 }
 0x1b4   :  { %277 = dma.vmem_to_hbm [thread:$0]  %s273_s20, 128, %s275_s22, [#allocation4]  }
 0x1b5   :  { %477 = dma.done.wait [#allocation4], 128  }
 0x1b6   :  { %478 = vsyncadd [#allocation4], 4294967168 }
 0x1b7   :  { %282 = vsyncpa [#allocation3], 1 }
 0x1b8   :  { %283 = vsyncpa [#allocation6], 1 }
 0x1b9   :  { %284 = vsyncpa [#allocation9], 1 }
 0x1ba   :  { %285 = vsyncpa [#allocation12], 1 }
 0x1bb   :  { %286 = vsyncpa [#allocation4], 1 }

</bundles_post_ra>
